<compile_context>
chip_gen: v6e
topology: v6e:2x2x1
jax: 0.10.0
libtpu: 0.0.40
codegen_flags: <defaults>
</compile_context>

<pallas_src>
import functools
import math

import jax
import jax.numpy as jnp
from jax.experimental import pallas as pl
from jax.experimental.pallas import tpu as pltpu


def _rup(v, m):
    return ((v + m - 1) // m) * m


# ----------------------------------------------------------------------------
# glue: kernel-weight interpolation (matches F.interpolate(mode='linear',
# align_corners=True) applied to the (C, 1, K) depthwise weight).
# ----------------------------------------------------------------------------
def interp_linear_align_corners(w, k_out):
    # w: (C, k_in) -> (C, k_out)
    c, k_in = w.shape
    if k_out == k_in:
        return w
    if k_out == 1:
        # TODO(synk): size-1 output of F.interpolate(align_corners=True) not
        # exercised by the current scales; verify against PyTorch if ever used.
        return w[:, :1]
    pos = jnp.arange(k_out, dtype=jnp.float32) * (k_in - 1) / (k_out - 1)
    lo = jnp.floor(pos).astype(jnp.int32)
    hi = jnp.minimum(lo + 1, k_in - 1)
    frac = (pos - lo.astype(jnp.float32))[None, :]
    return w[:, lo] * (1.0 - frac) + w[:, hi] * frac


# ----------------------------------------------------------------------------
# Pallas kernel: whole problem in one invocation, lane = b*L + t (padded to 128).
#   x_ref : (kc1p, NL)  im2col rows (tap-major, channel-minor) + a ones row
#   p_ref : (r1p+r2p+r3p, PCOLS) packed weight slab:
#             rows [0,      r1p) : MW' depthwise matrix (BN1 + dw bias folded)
#             rows [r1p, r1p+r2p): PW' block-diag pointwise (BN2 + bias folded)
#             rows [r1p+r2p, ...): AW' attention weights (bias folded)
#           each matrix carries an extra "ones propagation" row so all biases
#           ride inside the matmuls; unused rows/cols are zero.
#   o_ref : (O, NL) attention-pooled output (lanes >= B*L are don't-care)
# ----------------------------------------------------------------------------
def _elastic_dws_kernel(x_ref, p_ref, o_ref, *, n_scales, out_ch,
                        kc1p, r1p, r2p, r3p):
    n, O = n_scales, out_ch

    # (1) depthwise conv for ALL scales + folded dw-bias/BN1 + ReLU : one MXU dot.
    d = jnp.dot(p_ref[0:r1p, 0:kc1p], x_ref[...],
                preferred_element_type=jnp.float32)
    d = jnp.maximum(d, 0.0)                                # (r1p, NL); row n*C == 1

    # (2) pointwise conv (block-diagonal over scales) + bias/BN2 + ReLU : one dot.
    y = jnp.dot(p_ref[r1p:r1p + r2p, 0:r1p], d,
                preferred_element_type=jnp.float32)
    y = jnp.maximum(y, 0.0)                                # (r2p, NL); row n*O == 1

    # (3) attention logits (bias folded) : ONE dot instead of n serialized dots.
    lg = jnp.dot(p_ref[r1p + r2p:r1p + r2p + r3p, 0:r2p], y,
                 preferred_element_type=jnp.float32)
    logits = lg[0:n, :]                                    # (n, NL)

    # (4) softmax over scales; reciprocal on the EUP + one Newton step.
    m = jnp.max(logits, axis=0, keepdims=True)
    e = jnp.exp(logits - m)
    den = jnp.sum(e, axis=0, keepdims=True)
    inv = pl.reciprocal(den, approx=True)
    inv = inv * (2.0 - den * inv)                          # Newton refinement
    att = e * inv                                          # (n, NL)

    # (5) attention-weighted combine of the per-scale features (tree sum).
    terms = [y[s * O:(s + 1) * O, :] * att[s:s + 1, :] for s in range(n)]
    while len(terms) > 1:
        nxt = [terms[i] + terms[i + 1] for i in range(0, len(terms) - 1, 2)]
        if len(terms) % 2:
            nxt.append(terms[-1])
        terms = nxt
    o_ref[...] = terms[0]                                  # (O, NL) unmasked store


# ----------------------------------------------------------------------------
# wrapper
# ----------------------------------------------------------------------------
def elastic_dws_conv_block(x, params, *, base_kernel_size, kernel_scales):
    B, C, L = x.shape
    n = len(kernel_scales)
    O = params["pw_w"].shape[0]
    BL = B * L
    NL = _rup(BL, 128)                       # lane-dense padding
    eps = 1e-5

    # --- per-scale kernel sizes and 'same' padding (matches conv1d_same_padding) ---
    ksizes = [int(math.floor(base_kernel_size * sc)) for sc in kernel_scales]
    K_max = max(ksizes)
    pls = [(k - 1) // 2 for k in ksizes]
    prs = [(k - 1) // 2 + ((k - 1) % 2) for k in ksizes]
    PL, PR = max(pls), max(prs)
    offs = [PL - p for p in pls]             # global tap offset per scale

    # --- eval-mode BatchNorm folding ---
    bn1_scale = params["bn1_gamma"] / jnp.sqrt(params["bn1_var"] + eps)      # (n, C)
    bn1_shift = params["bn1_beta"] - params["bn1_mean"] * bn1_scale          # (n, C)
    b1_eff = bn1_scale * params["dw_b"][None, :] + bn1_shift                 # (n, C)
    bn2_scale = params["bn2_gamma"] / jnp.sqrt(params["bn2_var"] + eps)      # (O,)
    pw_w_eff = bn2_scale[:, None] * params["pw_w"]                           # (O, C)
    pw_b_eff = (bn2_scale * params["pw_b"] + params["bn2_beta"]
                - params["bn2_mean"] * bn2_scale)                            # (O,)

    # --- sizes: each fused matrix gets one extra "ones propagation" row/col ---
    KC1 = K_max * C + 1                      # im2col rows + ones row
    R1 = n * C + 1                           # depthwise outputs + ones row
    R2 = n * O + 1                           # pointwise outputs + ones row
    KC1p, R1p, R2p, R3p = _rup(KC1, 8), _rup(R1, 8), _rup(R2, 8), _rup(n, 8)
    PCOLS = max(KC1p, R1p, R2p)

    # --- MW' (R1, KC1): all scales' depthwise convs as one sparse matrix,
    #     BN1 scale + dw bias folded, plus the ones-propagation row ---
    eyeC = jnp.eye(C, dtype=jnp.float32)
    rows = []
    for s, (k, off) in enumerate(zip(ksizes, offs)):
        w = interp_linear_align_corners(params["dw_w"], k)                   # (C, k)
        w = bn1_scale[s][:, None] * w
        w_full = jnp.zeros((C, K_max), jnp.float32).at[:, off:off + k].set(w)
        blk = jnp.einsum("cg,cd->cgd", w_full, eyeC).reshape(C, K_max * C)
        rows.append(jnp.concatenate([blk, b1_eff[s][:, None]], axis=1))      # (C, KC1)
    ones_r1 = jnp.zeros((1, KC1), jnp.float32).at[0, K_max * C].set(1.0)
    MW = jnp.concatenate(rows + [ones_r1], axis=0)                           # (R1, KC1)

    # --- PW' (R2, R1): block-diagonal pointwise conv, BN2 + bias folded ---
    pw_bd = jnp.einsum("st,oc->sotc", jnp.eye(n, dtype=jnp.float32),
                       pw_w_eff).reshape(n * O, n * C)
    PW = jnp.concatenate([pw_bd, jnp.tile(pw_b_eff, n)[:, None]], axis=1)    # (n*O, R1)
    ones_r2 = jnp.zeros((1, R1), jnp.float32).at[0, n * C].set(1.0)
    PW = jnp.concatenate([PW, ones_r2], axis=0)                              # (R2, R1)

    # --- AW' (n, R2): attention 1x1 conv, bias folded ---
    AW = jnp.concatenate([params["attn_w"], params["attn_b"][:, None]], axis=1)

    # --- pack the three matrices into ONE 8-row-aligned param slab (1 DMA) ---
    P = jnp.zeros((R1p + R2p + R3p, PCOLS), jnp.float32)
    P = P.at[0:R1, 0:KC1].set(MW.astype(jnp.float32))
    P = P.at[R1p:R1p + R2, 0:R1].set(PW.astype(jnp.float32))
    P = P.at[R1p + R2p:R1p + R2p + n, 0:R2].set(AW.astype(jnp.float32))

    # --- im2col X: row = tap*C + channel, plus a ones row; lane = b*L + t,
    #     zero-padded to a lane-dense 128 multiple ---
    x_pad = jnp.pad(x.astype(jnp.float32), ((0, 0), (0, 0), (PL, PR)))
    cols = jnp.stack([x_pad[:, :, g:g + L] for g in range(K_max)], axis=0)   # (K,B,C,L)
    Xm = cols.transpose(0, 2, 1, 3).reshape(K_max * C, BL)
    X = jnp.zeros((KC1p, NL), jnp.float32)
    X = X.at[:K_max * C, :BL].set(Xm)
    X = X.at[K_max * C, :BL].set(1.0)

    kernel = functools.partial(_elastic_dws_kernel, n_scales=n, out_ch=O,
                               kc1p=KC1p, r1p=R1p, r2p=R2p, r3p=R3p)

    out_k = pl.pallas_call(
        kernel,
        out_shape=jax.ShapeDtypeStruct((O, NL), jnp.float32),
        grid_spec=pltpu.PrefetchScalarGridSpec(
            num_scalar_prefetch=0,
            grid=(1,),                                      # whole problem in one step
            in_specs=[
                pl.BlockSpec((KC1p, NL), lambda i: (0, 0)),               # im2col
                pl.BlockSpec((R1p + R2p + R3p, PCOLS), lambda i: (0, 0)),  # packed params
            ],
            out_specs=pl.BlockSpec((O, NL), lambda i: (0, 0)),
        ),
        compiler_params=pltpu.CompilerParams(
            dimension_semantics=("arbitrary",)),
    )(X, P)

    # lane = b*L + t  ->  (B, O, L); drop padding lanes.
    return out_k[:, :BL].reshape(O, B, L).transpose(1, 0, 2)


# ----------------------------------------------------------------------------
# pure-JAX reference (same semantics, batched) for a correctness check
# ----------------------------------------------------------------------------
def reference(x, params, *, base_kernel_size, kernel_scales):
    eps = 1e-5
    B, C, L = x.shape
    bn1_scale = params["bn1_gamma"] / jnp.sqrt(params["bn1_var"] + eps)
    bn1_shift = params["bn1_beta"] - params["bn1_mean"] * bn1_scale
    bn2_scale = params["bn2_gamma"] / jnp.sqrt(params["bn2_var"] + eps)
    bn2_shift = params["bn2_beta"] - params["bn2_mean"] * bn2_scale
    ys = []
    for i, sc in enumerate(kernel_scales):
        k = int(math.floor(base_kernel_size * sc))
        w = interp_linear_align_corners(params["dw_w"], k)            # (C, k)
        p = (k - 1) // 2
        r = p + ((k - 1) % 2)
        xp = jnp.pad(x, ((0, 0), (0, 0), (p, r)))
        d = jnp.zeros((B, C, L), jnp.float32)
        for j in range(k):
            d = d + w[None, :, j:j + 1] * xp[:, :, j:j + L]
        d = d + params["dw_b"][None, :, None]
        d = jnp.maximum(bn1_scale[i][None, :, None] * d + bn1_shift[i][None, :, None], 0.0)
        y = jnp.einsum("oc,bcl->bol", params["pw_w"], d) + params["pw_b"][None, :, None]
        y = jnp.maximum(bn2_scale[None, :, None] * y + bn2_shift[None, :, None], 0.0)
        ys.append(y)
    feat = jnp.concatenate(ys, axis=1)                                # (B, n*O, L)
    logits = jnp.einsum("nc,bcl->bnl", params["attn_w"], feat) + params["attn_b"][None, :, None]
    wts = jax.nn.softmax(logits, axis=1)                              # (B, n, L)
    comb = jnp.stack(ys, axis=-1)                                     # (B, O, L, n)
    return jnp.sum(comb * wts[:, None, :, :].swapaxes(2, 3), axis=-1)  # (B, O, L)


if __name__ == "__main__":
    # module hyper-parameters
    B, C, O, L = 2, 4, 8, 16
    base_kernel_size = 5
    kernel_scales = [1, 2, 3]
    n = len(kernel_scales)

    key = jax.random.PRNGKey(0)
    ks = jax.random.split(key, 16)
    params = {
        "dw_w": 0.2 * jax.random.normal(ks[0], (C, base_kernel_size), jnp.float32),
        "dw_b": 0.1 * jax.random.normal(ks[1], (C,), jnp.float32),
        "bn1_gamma": 1.0 + 0.1 * jax.random.normal(ks[2], (n, C), jnp.float32),
        "bn1_beta": 0.1 * jax.random.normal(ks[3], (n, C), jnp.float32),
        "bn1_mean": 0.1 * jax.random.normal(ks[4], (n, C), jnp.float32),
        "bn1_var": 1.0 + 0.1 * jnp.abs(jax.random.normal(ks[5], (n, C), jnp.float32)),
        "pw_w": 0.3 * jax.random.normal(ks[6], (O, C), jnp.float32),
        "pw_b": 0.1 * jax.random.normal(ks[7], (O,), jnp.float32),
        "bn2_gamma": 1.0 + 0.1 * jax.random.normal(ks[8], (O,), jnp.float32),
        "bn2_beta": 0.1 * jax.random.normal(ks[9], (O,), jnp.float32),
        "bn2_mean": 0.1 * jax.random.normal(ks[10], (O,), jnp.float32),
        "bn2_var": 1.0 + 0.1 * jnp.abs(jax.random.normal(ks[11], (O,), jnp.float32)),
        "attn_w": 0.2 * jax.random.normal(ks[12], (n, n * O), jnp.float32),
        "attn_b": 0.05 * jax.random.normal(ks[13], (n,), jnp.float32),
    }
    x = jax.random.normal(ks[14], (B, C, L), jnp.float32)

    out = elastic_dws_conv_block(
        x, params, base_kernel_size=base_kernel_size, kernel_scales=kernel_scales)
    out = jax.block_until_ready(out)

    ref = reference(x, params, base_kernel_size=base_kernel_size,
                    kernel_scales=kernel_scales)
    assert out.shape == (B, O, L)
    # tolerance sized for MXU fp32-pass rounding of the fused dots plus the EUP
    # approximate reciprocal (+ Newton step) in the softmax; real semantic errors
    # (padding shift, bias/BN misfold) are O(1e-1) and would still be caught.
    err = float(jnp.max(jnp.abs(out - ref)))
    assert jnp.allclose(out, ref, atol=5e-3, rtol=5e-3), f"max abs err = {err}"
    print("KERNEL_OK")
</pallas_src>

<mosaic_0001>
module attributes {stable_mosaic.version = 11 : i64} {
  func.func @_elastic_dws_kernel(%arg0: i32, %arg1: memref<64x128xf32, #tpu.memory_space<vmem>>, %arg2: memref<56x64xf32, #tpu.memory_space<vmem>>, %arg3: memref<8x128xf32, #tpu.memory_space<vmem>>) attributes {dimension_semantics = [#tpu.dimension_semantics<arbitrary>], iteration_bounds = array<i64: 1>, scalar_prefetch = 0 : i64, scratch_operands = 0 : i64, tpu.core_type = #tpu.core_type<tc>, window_params = [{pipeline_mode = #tpu.pipeline_mode<synchronous>, transform_indices = @transform_0, window_bounds = array<i64: 64, 128>}, {pipeline_mode = #tpu.pipeline_mode<synchronous>, transform_indices = @transform_1, window_bounds = array<i64: 56, 64>}, {pipeline_mode = #tpu.pipeline_mode<synchronous>, transform_indices = @transform_2, window_bounds = array<i64: 8, 128>}]} {
    %c0 = arith.constant 0 : index
    %c0_0 = arith.constant 0 : index
    %0 = vector.load %arg2[%c0, %c0_0] : memref<56x64xf32, #tpu.memory_space<vmem>>, vector<16x64xf32>
    %c0_1 = arith.constant 0 : index
    %c0_2 = arith.constant 0 : index
    %1 = vector.load %arg1[%c0_1, %c0_2] : memref<64x128xf32, #tpu.memory_space<vmem>>, vector<64x128xf32>
    %cst = arith.constant dense<0.000000e+00> : vector<16x128xf32>
    %2 = tpu.matmul %0, %1, %cst {dimension_numbers = #tpu.dot_dimension_numbers<[1], [0], [0], [1], [0, 0, 1, 1], [], []>} : vector<16x64xf32>, vector<64x128xf32>, vector<16x128xf32> -> vector<16x128xf32>
    %cst_3 = arith.constant 0.000000e+00 : f32
    %3 = vector.broadcast %cst_3 : f32 to vector<16x128xf32>
    %4 = arith.maximumf %2, %3 : vector<16x128xf32>
    %c16 = arith.constant 16 : index
    %c0_4 = arith.constant 0 : index
    %5 = vector.load %arg2[%c16, %c0_4] : memref<56x64xf32, #tpu.memory_space<vmem>>, vector<32x16xf32>
    %cst_5 = arith.constant dense<0.000000e+00> : vector<32x128xf32>
    %6 = tpu.matmul %5, %4, %cst_5 {dimension_numbers = #tpu.dot_dimension_numbers<[1], [0], [0], [1], [0, 0, 1, 1], [], []>} : vector<32x16xf32>, vector<16x128xf32>, vector<32x128xf32> -> vector<32x128xf32>
    %cst_6 = arith.constant 0.000000e+00 : f32
    %7 = vector.broadcast %cst_6 : f32 to vector<32x128xf32>
    %8 = arith.maximumf %6, %7 : vector<32x128xf32>
    %c48 = arith.constant 48 : index
    %c0_7 = arith.constant 0 : index
    %9 = vector.load %arg2[%c48, %c0_7] : memref<56x64xf32, #tpu.memory_space<vmem>>, vector<8x32xf32>
    %cst_8 = arith.constant dense<0.000000e+00> : vector<8x128xf32>
    %10 = tpu.matmul %9, %8, %cst_8 {dimension_numbers = #tpu.dot_dimension_numbers<[1], [0], [0], [1], [0, 0, 1, 1], [], []>} : vector<8x32xf32>, vector<32x128xf32>, vector<8x128xf32> -> vector<8x128xf32>
    %11 = vector.extract_strided_slice %10 {offsets = [0, 0], sizes = [3, 128], strides = [1, 1]} : vector<8x128xf32> to vector<3x128xf32>
    %cst_9 = arith.constant dense<0xFF800000> : vector<128xf32>
    %12 = vector.multi_reduction <maximumf>, %11, %cst_9 [0] : vector<3x128xf32> to vector<128xf32>
    %13 = vector.shape_cast %12 : vector<128xf32> to vector<1x128xf32>
    %14 = vector.broadcast %13 : vector<1x128xf32> to vector<3x128xf32>
    %15 = arith.subf %11, %14 : vector<3x128xf32>
    %16 = math.exp %15 : vector<3x128xf32>
    %cst_10 = arith.constant dense<0.000000e+00> : vector<128xf32>
    %17 = vector.multi_reduction <add>, %16, %cst_10 [0] : vector<3x128xf32> to vector<128xf32>
    %18 = vector.shape_cast %17 : vector<128xf32> to vector<1x128xf32>
    %19 = tpu.reciprocal %18 {approx = true} : vector<1x128xf32> -> vector<1x128xf32>
    %20 = arith.mulf %18, %19 : vector<1x128xf32>
    %cst_11 = arith.constant 2.000000e+00 : f32
    %21 = vector.broadcast %cst_11 : f32 to vector<1x128xf32>
    %22 = arith.subf %21, %20 : vector<1x128xf32>
    %23 = arith.mulf %19, %22 : vector<1x128xf32>
    %24 = vector.broadcast %23 : vector<1x128xf32> to vector<3x128xf32>
    %25 = arith.mulf %16, %24 : vector<3x128xf32>
    %26 = vector.extract_strided_slice %8 {offsets = [0, 0], sizes = [8, 128], strides = [1, 1]} : vector<32x128xf32> to vector<8x128xf32>
    %27 = vector.extract_strided_slice %25 {offsets = [0, 0], sizes = [1, 128], strides = [1, 1]} : vector<3x128xf32> to vector<1x128xf32>
    %28 = vector.broadcast %27 : vector<1x128xf32> to vector<8x128xf32>
    %29 = arith.mulf %26, %28 : vector<8x128xf32>
    %30 = vector.extract_strided_slice %8 {offsets = [8, 0], sizes = [8, 128], strides = [1, 1]} : vector<32x128xf32> to vector<8x128xf32>
    %31 = vector.extract_strided_slice %25 {offsets = [1, 0], sizes = [1, 128], strides = [1, 1]} : vector<3x128xf32> to vector<1x128xf32>
    %32 = vector.broadcast %31 : vector<1x128xf32> to vector<8x128xf32>
    %33 = arith.mulf %30, %32 : vector<8x128xf32>
    %34 = vector.extract_strided_slice %8 {offsets = [16, 0], sizes = [8, 128], strides = [1, 1]} : vector<32x128xf32> to vector<8x128xf32>
    %35 = vector.extract_strided_slice %25 {offsets = [2, 0], sizes = [1, 128], strides = [1, 1]} : vector<3x128xf32> to vector<1x128xf32>
    %36 = vector.broadcast %35 : vector<1x128xf32> to vector<8x128xf32>
    %37 = arith.mulf %34, %36 : vector<8x128xf32>
    %38 = arith.addf %29, %33 : vector<8x128xf32>
    %39 = arith.addf %38, %37 : vector<8x128xf32>
    %c0_12 = arith.constant 0 : index
    %c0_13 = arith.constant 0 : index
    %40 = vector.load %arg3[%c0_12, %c0_13] : memref<8x128xf32, #tpu.memory_space<vmem>>, vector<8x128xf32>
    tpu.vector_store %arg3[%c0_12, %c0_13], %39 {strides = array<i32>} : memref<8x128xf32, #tpu.memory_space<vmem>>, vector<8x128xf32>,
    return
  }
  func.func @transform_0(%arg0: i32) -> (i32, i32) {
    %c0_i32 = arith.constant 0 : i32
    %c0_i32_0 = arith.constant 0 : i32
    %c0_i32_1 = arith.constant 0 : i32
    return %c0_i32, %c0_i32_0 : i32, i32
  }
  func.func @transform_1(%arg0: i32) -> (i32, i32) {
    %c0_i32 = arith.constant 0 : i32
    %c0_i32_0 = arith.constant 0 : i32
    %c0_i32_1 = arith.constant 0 : i32
    return %c0_i32, %c0_i32_0 : i32, i32
  }
  func.func @transform_2(%arg0: i32) -> (i32, i32) {
    %c0_i32 = arith.constant 0 : i32
    %c0_i32_0 = arith.constant 0 : i32
    %c0_i32_1 = arith.constant 0 : i32
    return %c0_i32, %c0_i32_0 : i32, i32
  }
}

</mosaic_0001>

<bundles_post_ra>
// kernel: tpu_custom_call.1
= control target key start
LH: loop header
LB: loop body
LE: loop exit
PB: predicated region body
PF: predicated region fallthrough
CT: control target
= control target key end

     0   :  { %7 = vsyncpa [#allocation3], 0  ;;  %s550_s0 = inlined_call_operand.hbm [shape: f32[64,128], index: 0, kind: input, shape index: {}]   ;;  %s551_s1 = inlined_call_operand.hbm [shape: f32[56,64], index: 1, kind: input, shape index: {}]   ;;  %s552_s2 = inlined_call_operand.hbm [shape: f32[8,128], index: 2, kind: output, shape index: {}]  }
   0x1   :  { %8 = vsyncpa [#allocation6], 0 }
   0x2   :  { %9 = vsyncpa [#allocation4], 0  ;;  %s517_s9 = smov [#allocation2]  }
   0x3   :  { %s15_s10 = sshll.u32 %s517_s9, 4  ;;  %s16_s10 = int_to_ptr.vmem [resolvable:$true] %s15_s10 }
   0x4   :  { %s459_s11 = scalar_lea.vmem %s16_s10, 1024  ;;  %p464_p1 = scmp.lt.s32.totalorder %s16_s10, %s16_s10 }
   0x5   :  { %p460_p0 = scmp.ne.s32.totalorder %s16_s10, %s459_s11  ;;  %p465_p2 = scmp.lt.s32.totalorder %s459_s11, %s459_s11 }
   0x7   :  { %p466_p3 = por %p465_p2, %p464_p1 }
   0x9   :  { %p467_p4 = pnand %p466_p3, %p460_p0 }
   0xb   :  { %470 = shalt.err (!%p467_p4)
}
   0xc   :  { %s518_s12 = smov 128   ;;  %s519_s13 = smov 8  }
   0xd   :  { %21 = dma.hbm_to_vmem [thread:$0]  %s550_s0, 1024, %s16_s10, [#allocation3], %s518_s12, %s518_s12, %s519_s13  }
   0xe   :  { %s520_s16 = smov [#allocation5]  }
   0xf   :  { %s27_s17 = sshll.u32 %s520_s16, 4  ;;  %s28_s17 = int_to_ptr.vmem [resolvable:$true] %s27_s17 }
  0x10   :  { %s479_s18 = scalar_lea.vmem %s28_s17, 896  ;;  %p484_p6 = scmp.lt.s32.totalorder %s28_s17, %s28_s17 }
  0x11   :  { %p480_p5 = scmp.ne.s32.totalorder %s28_s17, %s479_s18  ;;  %p485_p7 = scmp.lt.s32.totalorder %s479_s18, %s479_s18 }
  0x13   :  { %p486_p8 = por %p485_p7, %p484_p6 }
  0x15   :  { %p487_p9 = pnand %p486_p8, %p480_p5 }
  0x17   :  { %490 = shalt.err (!%p487_p9)
}
  0x18   :  { %33 = dma.hbm_to_vmem [thread:$0]  %s551_s1, 896, %s28_s17, [#allocation6], %s518_s12, %s518_s12, %s519_s13  }
  0x19   :  { %511 = dma.done.wait [#allocation3], 1024  }
  0x1a   :  { %512 = vsyncadd [#allocation3], 4294966272 }
  0x1b   :  { %513 = dma.done.wait [#allocation6], 896  }
  0x1c   :  { %514 = vsyncadd [#allocation6], 4294966400  ;;  %v49_v0 = vld [vmem:[#allocation2 + $0x38] sm:$0xff]  ;;  %v48_v1 = vld [vmem:[#allocation2 + $0x30] sm:$0xff]  ;;  %vm50_vm0 = vcmask 523264   ;;  %vm138_vm1 = vcmask 130048   ;;  %v338_v47 = vlaneseq }
  0x1d   :  { %400 = vmatprep.subr.mxu0 %v49_v0  ;;  %v47_v2 = vld [vmem:[#allocation2 + $0x28] sm:$0xff]  ;;  %v40_v3 = vld [vmem:[#allocation5] sm:$0xff]  ;;  %v45_v5 = vld [vmem:[#allocation2 + $0x18] sm:$0xff]  ;;  %v521_v18 = vmov 0.0   ;;  %vm522_vm2 = vmmov 0   ;;  %vm241_vm3 = vcmask 261120  }
  0x1e   :  { %401 = vmatpush3.msra.mxu0 %v49_v0  ;;  %416 = vmatprep.mubr.msk.f32.mxu0 %vm50_vm0, %v40_v3  ;;  %v46_v4 = vld [vmem:[#allocation2 + $0x20] sm:$0xff]  ;;  %v44_v6 = vld [vmem:[#allocation2 + $0x10] sm:$0xff]  ;;  %v43_v7 = vld [vmem:[#allocation2 + $0x8] sm:$0xff]  ;;  %vm315_vm4 = vcmask 1042432   ;;  %v339_v50 = vshrl.u32 %v338_v47, 7  ;;  %s523_s0 = smov [#allocation7]  }
  0x1f   :  { %402 = vmatprep.subr.mxu0 %v48_v1  ;;  %v42_v8 = vld [vmem:[#allocation2] sm:$0xff]  ;;  %v41_v9 = vld [vmem:[#allocation5 + $0x8] sm:$0xff]  ;;  %v134_v10 = vld [vmem:[#allocation5 + $0x10] sm:$0xff]  ;;  %s362_s1 = sshll.u32 %s523_s0, 4  ;;  %s363_s1 = int_to_ptr.vmem [resolvable:$true] %s362_s1 }
  0x20   :  { %403 = vmatpush3.msra.mxu0 %v48_v1  ;;  %423 = vmatprep.mubr.msk.f32.mxu1 %vm138_vm1, %v134_v10  ;;  %v135_v15 = vld [vmem:[#allocation5 + $0x18] sm:$0xff]  ;;  %v136_v16 = vld [vmem:[#allocation5 + $0x20] sm:$0xff]  ;;  %v137_v17 = vld [vmem:[#allocation5 + $0x28] sm:$0xff]  ;;  %v340_v53 = vsub.s32 0, %v339_v50  ;;  %v345_v54 = vsub.s32 1, %v339_v50  ;;  %v350_v55 = vsub.s32 2, %v339_v50  ;;  %p496_p11 = scmp.lt.s32.totalorder %s363_s1, %s363_s1 }
  0x21   :  { %404 = vmatprep.subr.mxu0 %v47_v2  ;;  %v240_v27 = vld [vmem:[#allocation5 + $0x30] sm:$0xff]  ;;  %s491_s21 = scalar_lea.vmem %s363_s1, 128 }
  0x22   :  { %405 = vmatpush3.msra.mxu0 %v47_v2  ;;  %p492_p10 = scmp.ne.s32.totalorder %s363_s1, %s491_s21  ;;  %p497_p12 = scmp.lt.s32.totalorder %s491_s21, %s491_s21 }
  0x23   :  { %406 = vmatprep.subr.mxu0 %v46_v4 }
  0x24   :  { %407 = vmatpush3.msra.mxu0 %v46_v4  ;;  %p498_p13 = por %p497_p12, %p496_p11 }
  0x25   :  { %408 = vmatprep.subr.mxu0 %v45_v5 }
  0x26   :  { %409 = vmatpush3.msra.mxu0 %v45_v5  ;;  %p499_p0 = pnand %p498_p13, %p492_p10 }
  0x27   :  { %410 = vmatprep.subr.mxu0 %v44_v6 }
  0x28   :  { %411 = vmatpush3.msra.mxu0 %v44_v6 }
  0x29   :  { %412 = vmatprep.subr.mxu0 %v43_v7 }
  0x2a   :  { %413 = vmatpush3.msra.mxu0 %v43_v7 }
  0x2b   :  { %414 = vmatprep.subr.mxu0 %v42_v8 }
  0x2c   :  { %415 = vmatpush3.msra.mxu0 %v42_v8 }
  0x2d   :  { %417 = vmatmul.mubr.msk.f32.vlgmr.msra.gmra.mxu0 %vm50_vm0, %v41_v9 }
  0xed   :  { %v418_v11 = vpop.f32.mrf.mxu0 }
  0xee   :  { %v133_v12 = vmax.f32 %v418_v11, 0.0 }
  0xef   :  { %v123_v13 = vpop.f32.mrf.mxu0 }
  0xf0   :  { %v132_v14 = vmax.f32 %v123_v13, 0.0  ;;  %419 = vmatprep.subr.mxu1 %v133_v12 }
  0xf1   :  { %420 = vmatpush3.msra.mxu1 %v133_v12 }
  0xf2   :  { %421 = vmatprep.subr.mxu1 %v132_v14 }
  0xf3   :  { %422 = vmatpush3.msra.mxu1 %v132_v14 }
  0xf4   :  { %424 = vmatmul.mubr.msk.f32.vlgmr.msra.gmra.mxu1 %vm138_vm1, %v135_v15  ;;  %429 = vmatprep.subr.mxu1 %v521_v18 }
  0xf5   :  { %426 = vmatprep.mubr.msk.f32.mxu1 %vm138_vm1, %v136_v16 }
  0xf8   :  { %427 = vmatmul.mubr.msk.f32.gmra.mxu1 %vm138_vm1, %v137_v17 }
  0xf9   :  { %437 = vmatprep.mubr.msk.f32.mxu1 %vm522_vm2, %v521_v18 }
 0x1b4   :  { %v425_v19 = vpop.f32.mrf.mxu1 }
 0x1b5   :  { %v237_v25 = vmax.f32 %v425_v19, 0.0 }
 0x1b6   :  { %v217_v20 = vpop.f32.mrf.mxu1 }
 0x1b7   :  { %v236_v26 = vmax.f32 %v217_v20, 0.0 }
 0x1b8   :  { %v428_v21 = vpop.f32.mrf.mxu1 }
 0x1b9   :  { %v239_v22 = vmax.f32 %v428_v21, 0.0 }
 0x1ba   :  { %v227_v23 = vpop.f32.mrf.mxu1 }
 0x1bb   :  { %v238_v24 = vmax.f32 %v227_v23, 0.0  ;;  %430 = vmatpush3.msra.mxu1 %v239_v22 }
 0x1bc   :  { %431 = vmatprep.subr.mxu1 %v521_v18 }
 0x1bd   :  { %432 = vmatpush3.msra.mxu1 %v238_v24 }
 0x1be   :  { %433 = vmatprep.subr.mxu1 %v521_v18 }
 0x1bf   :  { %434 = vmatpush3.msra.mxu1 %v237_v25 }
 0x1c0   :  { %435 = vmatprep.subr.mxu1 %v521_v18 }
 0x1c1   :  { %436 = vmatpush3.msra.mxu1 %v236_v26 }
 0x1c2   :  { %438 = vmatmul.mubr.msk.f32.vlgmr.msra.gmra.mxu1 %vm241_vm3, %v240_v27 }
 0x282   :  { %v311_v28 = vpop.f32.mrf.mxu1 }
 0x283   :  { %v316_v29 = vsel %vm315_vm4, %v311_v28, -inf }
 0x284   :  { %v317_v30 = vrot.slane %v316_v29, 4  ;;  %v439_v31 = vpop.f32.mrf.mxu1 }
 0x286   :  { %v318_v32 = vmax.f32 %v316_v29, %v317_v30 }
 0x288   :  { %v319_v33 = vrot.slane %v318_v32, 2 }
 0x28a   :  { %v320_v34 = vmax.f32 %v318_v32, %v319_v33 }
 0x28c   :  { %v321_v35 = vrot.slane %v320_v34, 1 }
 0x28e   :  { %v322_v36 = vmax.f32 %v320_v34, %v321_v35 }
 0x290   :  { %v323_v37 = vsub.f32 %v311_v28, %v322_v36 }
 0x292   :  { %v324_v38 = vmul.f32 1.442695, %v323_v37 }
 0x294   :  { %447 = vpow2.f32 %v324_v38 }
 0x2a1   :  { %v448_v39 = vpop.eup %447 }
 0x2a2   :  { %v326_v40 = vsel %vm315_vm4, %v448_v39, 0.0 }
 0x2a3   :  { %v327_v41 = vrot.slane %v326_v40, 4 }
 0x2a5   :  { %v328_v42 = vadd.f32 %v327_v41, %v326_v40 }
 0x2a7   :  { %v329_v43 = vrot.slane %v328_v42, 2 }
 0x2a9   :  { %v330_v44 = vadd.f32 %v329_v43, %v328_v42 }
 0x2ab   :  { %v331_v45 = vrot.slane %v330_v44, 1 }
 0x2ad   :  { %v332_v46 = vadd.f32 %v331_v45, %v330_v44 }
 0x2af   :  { %449 = vrcp.f32 %v332_v46 }
 0x2bc   :  { %v450_v48 = vpop.eup %449 }
 0x2bd   :  { %v334_v49 = vmul.f32 %v450_v48, %v332_v46 }
 0x2bf   :  { %v335_v51 = vsub.f32 2.0, %v334_v49 }
 0x2c1   :  { %v336_v52 = vmul.f32 %v450_v48, %v335_v51 }
 0x2c3   :  { %v337_v56 = vmul.f32 %v448_v39, %v336_v52 }
 0x2c5   :  { %v341_v57 = vrot.slane %v337_v56, %v340_v53  ;;  %v346_v58 = vrot.slane %v337_v56, %v345_v54  ;;  %v351_v59 = vrot.slane %v337_v56, %v350_v55 }
 0x2c7   :  { %v342_v60 = vmul.f32 %v341_v57, %v236_v26  ;;  %v347_v61 = vmul.f32 %v346_v58, %v237_v25  ;;  %v352_v62 = vmul.f32 %v351_v59, %v238_v24 }
 0x2c9   :  { %v353_v63 = vadd.f32 %v347_v61, %v342_v60 }
 0x2cb   :  { %v354_v0 = vadd.f32 %v353_v63, %v352_v62 }
 0x2cd   :  { %355 = vst [vmem:[#allocation7] sm:$0xff] %v354_v0 }
 0x2ce   :  { %502 = shalt.err (!%p499_p0)
}
 0x2cf   :  { %365 = dma.vmem_to_hbm [thread:$0]  %s363_s1, 128, %s552_s2, [#allocation4]  }
 0x2d0   :  { %515 = dma.done.wait [#allocation4], 128  }
 0x2d1   :  { %516 = vsyncadd [#allocation4], 4294967168 }
 0x2d2   :  { %369 = vsyncpa [#allocation3], 1 }
 0x2d3   :  { %370 = vsyncpa [#allocation6], 1 }
 0x2d4   :  { %371 = vsyncpa [#allocation4], 1 }

</bundles_post_ra>
